<compile_context>
chip_gen: v7x
topology: tpu7x:2x2x1
jax: 0.10.0
libtpu: 0.0.40
codegen_flags: <defaults>
</compile_context>

<pallas_src>
import functools

import jax
import jax.numpy as jnp
from jax.experimental import pallas as pl
from jax.experimental.pallas import tpu as pltpu

INPUT_DIM = 28 * 28   # 784
OUTPUT_DIM = 10

N_PAD = 128           # pad the 10-wide output dim to a full lane group
TB_MAX = 2048         # max batch-tile rows (bf16 x: ~3.2 MiB per buffer)


def _linear_kernel(x_ref, w_ref, b_ref, o_ref):
    # x_ref: (tb, K), w_ref: (K, N_PAD), b_ref: (1, N_PAD), o_ref: (tb, N_PAD)
    acc = jnp.dot(x_ref[...], w_ref[...], preferred_element_type=jnp.float32)
    o_ref[...] = (acc + b_ref[...].astype(jnp.float32)).astype(o_ref.dtype)


def prepare_linear_params(weight, bias, n_pad=N_PAD, dtype=jnp.bfloat16):
    """One-time prep of PyTorch nn.Linear params for the kernel.

    weight: (OUTPUT_DIM, INPUT_DIM) -> (INPUT_DIM, n_pad) transposed,
            zero-padded, cast to `dtype` (bf16 by default; accumulation
            inside the kernel stays f32).
    bias:   (OUTPUT_DIM,)           -> (1, n_pad) zero-padded, kept in f32.
    """
    n_out, k = weight.shape
    w_kn = jnp.zeros((k, n_pad), dtype=dtype).at[:, :n_out].set(
        weight.T.astype(dtype))
    b_1n = jnp.zeros((1, n_pad), dtype=jnp.float32).at[:, :n_out].set(
        bias.astype(jnp.float32))
    return w_kn, b_1n


@functools.partial(jax.jit, static_argnames=("n_out", "tb", "return_padded"))
def logistic_regression_forward(x, w_kn, b_1n, *, n_out=OUTPUT_DIM, tb=None,
                                return_padded=False):
    """Equivalent of LogisticRegressionModel.forward (the nn.Linear).

    x:     (B, INPUT_DIM)       activations (bf16 recommended, f32 also works)
    w_kn:  (INPUT_DIM, N_PAD)   pre-transposed, zero-padded weight
    b_1n:  (1, N_PAD)           zero-padded f32 bias
    returns (B, n_out) in x.dtype, or the padded (B, N_PAD) logits if
    `return_padded=True` (so a consumer can fuse the lane slice).
    """
    B, K = x.shape
    n_pad = w_kn.shape[1]

    # Batch tiling.  No jnp.pad: the cdiv grid plus Pallas partial-block
    # handling covers a ragged last tile (OOB output rows are not written).
    if tb is None:
        tb = B if B <= TB_MAX else TB_MAX
    if tb != B and tb % 8 != 0:
        raise ValueError("tb must equal B or be a multiple of 8")
    grid = (pl.cdiv(B, tb),)

    out_padded = pl.pallas_call(
        _linear_kernel,
        out_shape=jax.ShapeDtypeStruct((B, n_pad), x.dtype),
        grid_spec=pltpu.PrefetchScalarGridSpec(
            num_scalar_prefetch=0,
            grid=grid,
            in_specs=[
                pl.BlockSpec((tb, K), lambda i: (i, 0)),     # x: streamed per tile
                pl.BlockSpec((K, n_pad), lambda i: (0, 0)),  # W: VMEM-resident
                pl.BlockSpec((1, n_pad), lambda i: (0, 0)),  # b: VMEM-resident
            ],
            out_specs=pl.BlockSpec((tb, n_pad), lambda i: (i, 0)),
        ),
        compiler_params=pltpu.CompilerParams(
            dimension_semantics=("parallel",),  # batch tiles are independent
        ),
    )(x, w_kn, b_1n)

    if return_padded:
        return out_padded
    return out_padded[:, :n_out]


if __name__ == "__main__":
    key = jax.random.PRNGKey(0)
    kx, kw, kb = jax.random.split(key, 3)

    batch = 10  # deliberately NOT a multiple of 8 to exercise ragged handling
    x_f32 = jax.random.normal(kx, (batch, INPUT_DIM), dtype=jnp.float32)

    # Deterministic nn.Linear-style init: U(-1/sqrt(in), 1/sqrt(in))
    bound = 1.0 / (INPUT_DIM ** 0.5)
    weight = jax.random.uniform(
        kw, (OUTPUT_DIM, INPUT_DIM), minval=-bound, maxval=bound,
        dtype=jnp.float32)
    bias = jax.random.uniform(
        kb, (OUTPUT_DIM,), minval=-bound, maxval=bound, dtype=jnp.float32)

    # Cast activations/weights to bf16 once at the data source (halves the
    # dominant HBM streams); bias and MXU accumulation stay f32.
    x = x_f32.astype(jnp.bfloat16)
    w_kn, b_1n = prepare_linear_params(weight, bias)

    # f32 reference of the original module; tolerance reflects bf16 in/out.
    ref = x_f32 @ weight.T + bias

    # 1) Default tiling: B <= TB_MAX -> single full-array block.
    out = jax.block_until_ready(logistic_regression_forward(x, w_kn, b_1n))
    assert out.shape == (batch, OUTPUT_DIM)
    assert jnp.allclose(out.astype(jnp.float32), ref, atol=2e-2, rtol=2e-2)

    # 2) Force a multi-tile ragged grid (tb=8 -> 2 grid steps, last block
    #    only partially valid) to exercise the cdiv + masked-write path.
    out_ragged = jax.block_until_ready(
        logistic_regression_forward(x, w_kn, b_1n, tb=8))
    assert out_ragged.shape == (batch, OUTPUT_DIM)
    assert jnp.allclose(out_ragged.astype(jnp.float32), ref,
                        atol=2e-2, rtol=2e-2)

    print("KERNEL_OK")
</pallas_src>

<mosaic_0001>
module attributes {stable_mosaic.version = 11 : i64} {
  func.func @_linear_kernel(%arg0: i32, %arg1: memref<10x784xbf16, #tpu.memory_space<vmem>>, %arg2: memref<784x128xbf16, #tpu.memory_space<vmem>>, %arg3: memref<1x128xf32, #tpu.memory_space<vmem>>, %arg4: memref<10x128xbf16, #tpu.memory_space<vmem>>) attributes {dimension_semantics = [#tpu.dimension_semantics<parallel>], iteration_bounds = array<i64: 1>, scalar_prefetch = 0 : i64, scratch_operands = 0 : i64, tpu.core_type = #tpu.core_type<tc>, window_params = [{transform_indices = @transform_0, window_bounds = array<i64: 10, 784>}, {pipeline_mode = #tpu.pipeline_mode<synchronous>, transform_indices = @transform_1, window_bounds = array<i64: 784, 128>}, {pipeline_mode = #tpu.pipeline_mode<synchronous>, transform_indices = @transform_2, window_bounds = array<i64: 1, 128>}, {transform_indices = @transform_3, window_bounds = array<i64: 10, 128>}]} {
    %c0 = arith.constant 0 : index
    %c0_0 = arith.constant 0 : index
    %0 = vector.load %arg1[%c0, %c0_0] : memref<10x784xbf16, #tpu.memory_space<vmem>>, vector<10x784xbf16>
    %c0_1 = arith.constant 0 : index
    %c0_2 = arith.constant 0 : index
    %1 = vector.load %arg2[%c0_1, %c0_2] : memref<784x128xbf16, #tpu.memory_space<vmem>>, vector<784x128xbf16>
    %cst = arith.constant dense<0.000000e+00> : vector<10x128xf32>
    %2 = tpu.matmul %0, %1, %cst {dimension_numbers = #tpu.dot_dimension_numbers<[1], [0], [0], [1], [0, 0, 1, 1], [], []>} : vector<10x784xbf16>, vector<784x128xbf16>, vector<10x128xf32> -> vector<10x128xf32>
    %c0_3 = arith.constant 0 : index
    %c0_4 = arith.constant 0 : index
    %3 = vector.load %arg3[%c0_3, %c0_4] : memref<1x128xf32, #tpu.memory_space<vmem>>, vector<1x128xf32>
    %4 = vector.broadcast %3 : vector<1x128xf32> to vector<10x128xf32>
    %5 = arith.addf %2, %4 : vector<10x128xf32>
    %6 = arith.truncf %5 : vector<10x128xf32> to vector<10x128xbf16>
    %c0_5 = arith.constant 0 : index
    %c0_6 = arith.constant 0 : index
    %7 = vector.load %arg4[%c0_5, %c0_6] : memref<10x128xbf16, #tpu.memory_space<vmem>>, vector<10x128xbf16>
    tpu.vector_store %arg4[%c0_5, %c0_6], %6 {strides = array<i32>} : memref<10x128xbf16, #tpu.memory_space<vmem>>, vector<10x128xbf16>,
    return
  }
  func.func @transform_0(%arg0: i32) -> (i32, i32) {
    %c0_i32 = arith.constant 0 : i32
    %c0_i32_0 = arith.constant 0 : i32
    return %arg0, %c0_i32 : i32, i32
  }
  func.func @transform_1(%arg0: i32) -> (i32, i32) {
    %c0_i32 = arith.constant 0 : i32
    %c0_i32_0 = arith.constant 0 : i32
    %c0_i32_1 = arith.constant 0 : i32
    return %c0_i32, %c0_i32_0 : i32, i32
  }
  func.func @transform_2(%arg0: i32) -> (i32, i32) {
    %c0_i32 = arith.constant 0 : i32
    %c0_i32_0 = arith.constant 0 : i32
    %c0_i32_1 = arith.constant 0 : i32
    return %c0_i32, %c0_i32_0 : i32, i32
  }
  func.func @transform_3(%arg0: i32) -> (i32, i32) {
    %c0_i32 = arith.constant 0 : i32
    %c0_i32_0 = arith.constant 0 : i32
    return %arg0, %c0_i32 : i32, i32
  }
}

</mosaic_0001>

<bundles_post_ra>
// kernel: logistic_regression_forward.1
= control target key start
LH: loop header
LB: loop body
LE: loop exit
PB: predicated region body
PF: predicated region fallthrough
CT: control target
= control target key end

     0   :  { %8 = vsyncpa [#allocation3], 0  ;;  %s1032_s0 = inlined_call_operand.hbm [shape: bf16[10,784], index: 0, kind: input, shape index: {}]   ;;  %s1033_s1 = inlined_call_operand.hbm [shape: bf16[784,128], index: 1, kind: input, shape index: {}]   ;;  %s1034_s2 = inlined_call_operand.vmem [shape: f32[1,128], index: 2, kind: input, shape index: {}]   ;;  %s1035_s3 = inlined_call_operand.hbm [shape: bf16[10,128], index: 3, kind: output, shape index: {}]  }
   0x1   :  { %9 = vsyncpa [#allocation6], 0 }
   0x2   :  { %10 = vsyncpa [#allocation4], 0  ;;  %s958_s12 = smov [#allocation2]   ;;  %s886_s16 = scalar_lea.hbm %s1032_s0, 896 }
   0x3   :  { %s16_s13 = sshll.u32 %s958_s12, 4  ;;  %p887_p0 = scmp.ne.s32.totalorder %s1032_s0, %s886_s16  ;;  %s17_s13 = int_to_ptr.vmem [resolvable:$true] %s16_s13 }
   0x4   :  { %p890_p1 = scmp.lt.u32.totalorder %s886_s16, %s1032_s0 }
   0x6   :  { %p892_p2 = pnand %p890_p1, %p887_p0 }
   0x8   :  { %895 = shalt.err (!%p892_p2)
}
   0x9   :  { %s896_s21 = scalar_lea.vmem %s17_s13, 896  ;;  %p901_p4 = scmp.lt.s32.totalorder %s17_s13, %s17_s13 }
   0xa   :  { %p897_p3 = scmp.ne.s32.totalorder %s17_s13, %s896_s21  ;;  %p902_p5 = scmp.lt.s32.totalorder %s896_s21, %s896_s21 }
   0xc   :  { %p903_p6 = por %p902_p5, %p901_p4 }
   0xe   :  { %p904_p7 = pnand %p903_p6, %p897_p3 }
  0x10   :  { %907 = shalt.err (!%p904_p7)
}
  0x11   :  { %s959_s22 = smov 448   ;;  %s960_s23 = smov 28  }
  0x12   :  { %22 = dma.hbm_to_vmem [thread:$0]  %s1032_s0, 896, %s17_s13, [#allocation3], %s959_s22, %s959_s22, %s960_s23  }
  0x13   :  { %s961_s26 = smov [#allocation5]   ;;  %s908_s30 = scalar_lea.hbm %s1033_s1, 6272 }
  0x14   :  { %s28_s27 = sshll.u32 %s961_s26, 4  ;;  %p909_p8 = scmp.ne.s32.totalorder %s1033_s1, %s908_s30  ;;  %s29_s27 = int_to_ptr.vmem [resolvable:$true] %s28_s27 }
  0x15   :  { %p912_p9 = scmp.lt.u32.totalorder %s908_s30, %s1033_s1 }
  0x17   :  { %p914_p10 = pnand %p912_p9, %p909_p8 }
  0x19   :  { %917 = shalt.err (!%p914_p10)
}
  0x1a   :  { %s918_s8 = scalar_lea.vmem %s29_s27, 6272  ;;  %p923_p12 = scmp.lt.s32.totalorder %s29_s27, %s29_s27 }
  0x1b   :  { %p919_p11 = scmp.ne.s32.totalorder %s29_s27, %s918_s8  ;;  %p924_p13 = scmp.lt.s32.totalorder %s918_s8, %s918_s8 }
  0x1d   :  { %p925_p0 = por %p924_p13, %p923_p12 }
  0x1f   :  { %p926_p1 = pnand %p925_p0, %p919_p11 }
  0x21   :  { %929 = shalt.err (!%p926_p1)
}
  0x22   :  { %s962_s0 = smov 64   ;;  %s963_s9 = smov 4  }
  0x23   :  { %34 = dma.hbm_to_vmem [thread:$0]  %s1033_s1, 6272, %s29_s27, [#allocation6], %s962_s0, %s962_s0, %s963_s9  }
  0x24   :  { %952 = dma.done.wait [#allocation3], 896  }
  0x25   :  { %953 = vsyncadd [#allocation3], 4294966400 }
  0x26   :  { %954 = dma.done.wait [#allocation6], 6272  }
  0x27   :  { %955 = vsyncadd [#allocation6], 4294961024  ;;  %v827_v0 = vld [vmem:[#allocation5 + $0x40] sm:$0xff]   ;;  %v831_v4 = vld [vmem:[#allocation5 + $0x48] sm:$0xff]   ;;  %v964_v37 = vmov 0.0   ;;  %vm965_vm0 = vmmov 0  }
  0x28   :  { %v828_v1 = vld [vmem:[#allocation5] sm:$0xff]   ;;  %744 = vmatprep.subr.bf16.mxu0 %v827_v0  ;;  %v832_v5 = vld [vmem:[#allocation5 + $0x8] sm:$0xff]   ;;  %v835_v8 = vld [vmem:[#allocation5 + $0x50] sm:$0xff]   ;;  %vm486_vm1 = vcmask 130048  }
  0x29   :  { %v829_v2 = vld [vmem:[#allocation5 + $0xc0] sm:$0xff]   ;;  %745 = vmatpush3.bf16.msra.mxu0 %v828_v1  ;;  %v833_v6 = vld [vmem:[#allocation5 + $0xc8] sm:$0xff]   ;;  %v836_v9 = vld [vmem:[#allocation5 + $0x10] sm:$0xff]  }
  0x2a   :  { %v830_v3 = vld [vmem:[#allocation5 + $0x80] sm:$0xff]   ;;  %766 = vmatprep.subr.bf16.mxu1 %v829_v2  ;;  %746 = vmatprep.subr.bf16.mxu0 %v831_v4  ;;  %v834_v7 = vld [vmem:[#allocation5 + $0x88] sm:$0xff]   ;;  %v837_v10 = vld [vmem:[#allocation5 + $0xd0] sm:$0xff]  }
  0x2b   :  { %767 = vmatpush3.bf16.msra.mxu1 %v830_v3  ;;  %v838_v11 = vld [vmem:[#allocation5 + $0x90] sm:$0xff]   ;;  %v839_v12 = vld [vmem:[#allocation5 + $0x58] sm:$0xff]   ;;  %v843_v16 = vld [vmem:[#allocation5 + $0x60] sm:$0xff]  }
  0x2c   :  { %768 = vmatprep.subr.bf16.mxu1 %v833_v6  ;;  %v840_v13 = vld [vmem:[#allocation5 + $0x18] sm:$0xff]   ;;  %v844_v17 = vld [vmem:[#allocation5 + $0x20] sm:$0xff]   ;;  %v847_v20 = vld [vmem:[#allocation5 + $0x68] sm:$0xff]  }
  0x2d   :  { %747 = vmatpush3.bf16.msra.mxu0 %v832_v5  ;;  %v841_v14 = vld [vmem:[#allocation5 + $0xd8] sm:$0xff]   ;;  %v845_v18 = vld [vmem:[#allocation5 + $0xe0] sm:$0xff]   ;;  %v848_v21 = vld [vmem:[#allocation5 + $0x28] sm:$0xff]  }
  0x2e   :  { %748 = vmatprep.subr.bf16.mxu0 %v835_v8  ;;  %v842_v15 = vld [vmem:[#allocation5 + $0x98] sm:$0xff]   ;;  %v846_v19 = vld [vmem:[#allocation5 + $0xa0] sm:$0xff]   ;;  %v849_v22 = vld [vmem:[#allocation5 + $0xe8] sm:$0xff]  }
  0x2f   :  { %769 = vmatpush3.bf16.msra.mxu1 %v834_v7  ;;  %v850_v23 = vld [vmem:[#allocation5 + $0xa8] sm:$0xff]   ;;  %v851_v24 = vld [vmem:[#allocation5 + $0x70] sm:$0xff]   ;;  %v855_v28 = vld [vmem:[#allocation5 + $0x78] sm:$0xff]  }
  0x30   :  { %770 = vmatprep.subr.bf16.mxu1 %v837_v10  ;;  %v852_v25 = vld [vmem:[#allocation5 + $0x30] sm:$0xff]   ;;  %v856_v29 = vld [vmem:[#allocation5 + $0x38] sm:$0xff]   ;;  %v858_v31 = vld [vmem:[#allocation2] ss:$28 sps:$4 sm:$0x1f]  }
  0x31   :  { %749 = vmatpush3.bf16.msra.mxu0 %v836_v9  ;;  %v853_v26 = vld [vmem:[#allocation5 + $0xf0] sm:$0xff]   ;;  %v857_v30 = vld [vmem:[#allocation5 + $0xf8] sm:$0xff]   ;;  %v860_v32 = vld [vmem:[#allocation2 + $0x4] ss:$28 sps:$4 sm:$0x1f]  }
  0x32   :  { %750 = vmatprep.subr.bf16.mxu0 %v839_v12  ;;  %v854_v27 = vld [vmem:[#allocation5 + $0xb0] sm:$0xff]   ;;  %v861_v33 = vld [vmem:[#allocation5 + $0xb8] sm:$0xff]   ;;  %522 = vmatprep.mubr.bf16.mxu0 %v860_v32  ;;  %v862_v34 = vld [vmem:[#allocation5 + $0x140] sm:$0xff]  }
  0x33   :  { %771 = vmatpush3.bf16.msra.mxu1 %v838_v11  ;;  %v863_v35 = vld [vmem:[#allocation2 + $0x8] ss:$28 sps:$4 sm:$0x1f]   ;;  %v866_v38 = vld [vmem:[#allocation5 + $0x100] sm:$0xff]   ;;  %v871_v43 = vld [vmem:[#allocation5 + $0x158] sm:$0xff]  }
  0x34   :  { %772 = vmatprep.subr.bf16.mxu1 %v841_v14  ;;  %v865_v36 = vld [vmem:[#allocation2 + $0xc] ss:$28 sps:$4 sm:$0x1f]   ;;  %v867_v39 = vld [vmem:[#allocation5 + $0x148] sm:$0xff]   ;;  %v872_v44 = vld [vmem:[#allocation5 + $0x118] sm:$0xff]  }
  0x35   :  { %751 = vmatpush3.bf16.msra.mxu0 %v840_v13  ;;  %563 = vmatprep.mubr.bf16.mxu1 %v865_v36  ;;  %v868_v40 = vld [vmem:[#allocation5 + $0x108] sm:$0xff]   ;;  %v869_v41 = vld [vmem:[#allocation5 + $0x150] sm:$0xff]   ;;  %v873_v45 = vld [vmem:[#allocation5 + $0x160] sm:$0xff]  }
  0x36   :  { %752 = vmatprep.subr.bf16.mxu0 %v843_v16  ;;  %v870_v42 = vld [vmem:[#allocation5 + $0x110] sm:$0xff]   ;;  %v874_v46 = vld [vmem:[#allocation5 + $0x120] sm:$0xff]   ;;  %v875_v47 = vld [vmem:[#allocation5 + $0x168] sm:$0xff]  }
  0x37   :  { %773 = vmatpush3.bf16.msra.mxu1 %v842_v15  ;;  %v881_v48 = vld [vmem:[#allocation5 + $0x180] sm:$0xff]   ;;  %v884_v49 = vld [vmem:[#allocation2 + $0x14] ss:$28 sps:$4 sm:$0x1f]   ;;  %v876_v50 = vld [vmem:[#allocation5 + $0x128] sm:$0xff]  }
  0x38   :  { %774 = vmatprep.subr.bf16.mxu1 %v845_v18  ;;  %v885_v51 = vld [vmem:[#allocation2 + $0x18] ss:$28 sps:$4 sm:$0x1f]   ;;  %v877_v52 = vld [vmem:[#allocation5 + $0x170] sm:$0xff]   ;;  %v682_v58 = vld [vmem:[%s1034_s2] ss:$0 sm:$0xff] }
  0x39   :  { %753 = vmatpush3.bf16.msra.mxu0 %v844_v17  ;;  %v878_v53 = vld [vmem:[#allocation5 + $0x130] sm:$0xff]   ;;  %v879_v54 = vld [vmem:[#allocation5 + $0x178] sm:$0xff]   ;;  %s966_s2 = smov [#allocation7]  }
  0x3a   :  { %754 = vmatprep.subr.bf16.mxu0 %v847_v20  ;;  %v880_v55 = vld [vmem:[#allocation5 + $0x138] sm:$0xff]   ;;  %s669_s13 = sshll.u32 %s966_s2, 4  ;;  %s670_s13 = int_to_ptr.vmem [resolvable:$true] %s669_s13 }
  0x3b   :  { %775 = vmatpush3.bf16.msra.mxu1 %v846_v19  ;;  %v882_v56 = vld [vmem:[#allocation2 + $0x10] ss:$28 sps:$4 sm:$0x1f]   ;;  %s930_s14 = scalar_lea.vmem %s670_s13, 128  ;;  %p935_p3 = scmp.lt.s32.totalorder %s670_s13, %s670_s13 }
  0x3c   :  { %776 = vmatprep.subr.bf16.mxu1 %v849_v22  ;;  %p931_p2 = scmp.ne.s32.totalorder %s670_s13, %s930_s14  ;;  %p936_p4 = scmp.lt.s32.totalorder %s930_s14, %s930_s14 }
  0x3d   :  { %755 = vmatpush3.bf16.msra.mxu0 %v848_v21 }
  0x3e   :  { %756 = vmatprep.subr.bf16.mxu0 %v851_v24  ;;  %p937_p5 = por %p936_p4, %p935_p3 }
  0x3f   :  { %777 = vmatpush3.bf16.msra.mxu1 %v850_v23 }
  0x40   :  { %778 = vmatprep.subr.bf16.mxu1 %v853_v26  ;;  %p938_p6 = pnand %p937_p5, %p931_p2 }
  0x41   :  { %757 = vmatpush3.bf16.msra.mxu0 %v852_v25 }
  0x42   :  { %758 = vmatprep.subr.bf16.mxu0 %v855_v28 }
  0x43   :  { %779 = vmatpush3.bf16.msra.mxu1 %v854_v27 }
  0x44   :  { %780 = vmatprep.subr.bf16.mxu1 %v857_v30 }
  0x45   :  { %759 = vmatpush3.bf16.msra.mxu0 %v856_v29 }
  0x46   :  { %788 = vmatprep.subr.bf16.mxu0 %v862_v34 }
  0x47   :  { %781 = vmatpush3.bf16.msra.mxu1 %v861_v33 }
  0x48   :  { %523 = vmatmul.mubr.bf16.vlgmr.msra.gmra.mrb[0].mxu0 %v858_v31  ;;  %812 = vmatprep.subr.bf16.mxu1 %v964_v37 }
  0x49   :  { %789 = vmatpush3.bf16.msra.mxu0 %v866_v38  ;;  %604 = vmatprep.mubr.bf16.mxu0 %v884_v49 }
  0x4a   :  { %564 = vmatmul.mubr.bf16.vlgmr.msra.gmra.mrb[0].mxu1 %v863_v35  ;;  %790 = vmatprep.subr.bf16.mxu0 %v867_v39 }
  0x4b   :  { %814 = vmatprep.mubr.msk.bf16.mxu1 %vm965_vm0, %v964_v37  ;;  %813 = vmatpush3.bf16.msra.mxu1 %v881_v48 }
  0x4d   :  { %791 = vmatpush3.bf16.msra.mxu0 %v868_v40 }
  0x4e   :  { %792 = vmatprep.subr.bf16.mxu0 %v869_v41 }
  0x51   :  { %793 = vmatpush3.bf16.msra.mxu0 %v870_v42 }
  0x52   :  { %794 = vmatprep.subr.bf16.mxu0 %v871_v43  ;;  %815 = vmatmul.mubr.msk.bf16.vlgmr.msra.gmra.mrb[4].mxu1 %vm486_vm1, %v885_v51 }
  0x55   :  { %795 = vmatpush3.bf16.msra.mxu0 %v872_v44 }
  0x56   :  { %796 = vmatprep.subr.bf16.mxu0 %v873_v45 }
  0x59   :  { %797 = vmatpush3.bf16.msra.mxu0 %v874_v46 }
  0x5a   :  { %798 = vmatprep.subr.bf16.mxu0 %v875_v47 }
  0x5d   :  { %799 = vmatpush3.bf16.msra.mxu0 %v876_v50 }
  0x5e   :  { %800 = vmatprep.subr.bf16.mxu0 %v877_v52 }
  0x61   :  { %801 = vmatpush3.bf16.msra.mxu0 %v878_v53 }
  0x62   :  { %802 = vmatprep.subr.bf16.mxu0 %v879_v54 }
  0x65   :  { %803 = vmatpush3.bf16.msra.mxu0 %v880_v55 }
  0x68   :  { %605 = vmatmul.mubr.bf16.vlgmr.msra.gmra.mrb[4].mxu0 %v882_v56 }
 0x11b   :  { %v760_v57 = vpop.f32.mrb[0].mxu0 }
 0x11c   :  { %v761_v59 = vpop.f32.mrb[1].mxu0 }
 0x11d   :  { %v762_v60 = vadd.f32 %v761_v59, %v760_v57  ;;  %v763_v61 = vpop.f32.mrb[2].mxu0  ;;  %v782_v62 = vpop.f32.mrb[0].mxu1 }
 0x11e   :  { %v764_v63 = vpop.f32.mrb[3].mxu0  ;;  %v783_v2 = vpop.f32.mrb[1].mxu1 }
 0x11f   :  { %v525_v0 = vadd.f32 %v762_v60, %v682_v58  ;;  %v765_v1 = vadd.f32 %v764_v63, %v763_v61  ;;  %v784_v3 = vadd.f32 %v783_v2, %v782_v62  ;;  %v785_v4 = vpop.f32.mrb[2].mxu1 }
 0x120   :  { %v786_v6 = vpop.f32.mrb[3].mxu1 }
 0x121   :  { %v528_v5 = vadd.f32 %v765_v1, %v682_v58  ;;  %v566_v7 = vadd.f32 %v784_v3, %v525_v0  ;;  %v787_v8 = vadd.f32 %v786_v6, %v785_v4 }
 0x123   :  { %v569_v9 = vadd.f32 %v787_v8, %v528_v5 }
 0x125   :  { %v647_v10 = vpop.f32.mrb[4].mxu1 }
 0x126   :  { %v816_v11 = vpop.f32.mrb[5].mxu1 }
 0x127   :  { %v650_v12 = vpop.f32.mrb[6].mxu1 }
 0x128   :  { %v817_v13 = vpop.f32.mrb[7].mxu1 }
 0x13b   :  { %v804_v14 = vpop.f32.mrb[4].mxu0 }
 0x13c   :  { %v805_v15 = vpop.f32.mrb[5].mxu0 }
 0x13d   :  { %v806_v16 = vadd.f32 %v805_v15, %v804_v14  ;;  %v807_v17 = vpop.f32.mrb[6].mxu0 }
 0x13e   :  { %v808_v18 = vpop.f32.mrb[7].mxu0 }
 0x13f   :  { %v607_v19 = vadd.f32 %v806_v16, %v566_v7  ;;  %v809_v20 = vadd.f32 %v808_v18, %v807_v17 }
 0x141   :  { %v648_v21 = vadd.f32 %v647_v10, %v607_v19  ;;  %v610_v22 = vadd.f32 %v809_v20, %v569_v9 }
 0x143   :  { %v742_v23 = vpack.c.bf16 %v648_v21, %v648_v21  ;;  %v651_v24 = vadd.f32 %v650_v12, %v610_v22 }
 0x145   :  { %662 = vst [vmem:[#allocation7] sm:$0xf] %v742_v23  ;;  %v743_v25 = vpack.c.bf16 %v651_v24, %v651_v24 }
 0x147   :  { %663 = vst [vmem:[#allocation7 + $0x4] sm:$0x1] %v743_v25 }
 0x148   :  { %941 = shalt.err (!%p938_p6)
}
 0x149   :  { %s942_s17 = scalar_lea.hbm %s1035_s3, 128 }
 0x14a   :  { %p943_p7 = scmp.ne.s32.totalorder %s1035_s3, %s942_s17  ;;  %p946_p8 = scmp.lt.u32.totalorder %s942_s17, %s1035_s3 }
 0x14c   :  { %p948_p9 = pnand %p946_p8, %p943_p7 }
 0x14e   :  { %951 = shalt.err (!%p948_p9)
}
 0x14f   :  { %675 = dma.vmem_to_hbm [thread:$0]  %s670_s13, 128, %s1035_s3, [#allocation4], %s962_s0, %s962_s0, %s963_s9  }
 0x150   :  { %956 = dma.done.wait [#allocation4], 128  }
 0x151   :  { %957 = vsyncadd [#allocation4], 4294967168 }
 0x152   :  { %679 = vsyncpa [#allocation3], 1 }
 0x153   :  { %680 = vsyncpa [#allocation6], 1 }
 0x154   :  { %681 = vsyncpa [#allocation4], 1 }

</bundles_post_ra>
